<compile_context>
chip_gen: v6e
topology: v6e:2x2x1
jax: 0.10.0
libtpu: 0.0.40
codegen_flags: <defaults>
</compile_context>

<pallas_src>
import jax
import jax.numpy as jnp
from jax.experimental import pallas as pl
from jax.experimental.pallas import tpu as pltpu


def attn_pool_kernel(x_ref, m_ref, w1_ref, b1_ref, w2_ref, b2_ref, o_ref):
    # x_ref: (TB, T, H) native dtype   m_ref: (TB, T) f32 (lane-dense)
    # w1: (H, P) native   b1: (1, P) f32   w2_row: (1, P) f32   b2: (1, 1) f32
    # o_ref: (TB, H)
    TB, T, H = x_ref.shape
    P = w1_ref.shape[1]

    x = x_ref[...]                 # keep native dtype; MXU accumulates in f32
    mask = m_ref[...]              # (TB, T) f32

    # --- intermediate projector: one MXU matmul over all TB*T rows ----------------
    h = jnp.dot(x.reshape(TB * T, H), w1_ref[...],
                preferred_element_type=jnp.float32)            # (TB*T, P) f32
    h = jnp.maximum(h + b1_ref[...], 0.0)                      # bias + ReLU

    # --- projector P -> 1: VPU multiply + lane reduce (no width-1 MXU pass) -------
    # mask is 0/1, so (h * mask) @ w2 == mask * (h @ w2) exactly; fold mask afterwards
    z = jnp.sum(h.reshape(TB, T, P) * w2_ref[...], axis=-1)    # (TB, T) lane-dense
    logits = z * mask + b2_ref[...]                            # (TB, T)

    # --- AllenNLP masked_softmax (memory_efficient=False), lane-dense over T ------
    v = logits * mask
    v = v - jnp.max(v, axis=-1, keepdims=True)
    e = jnp.exp(v)
    # approx reciprocal is safe here: its relative error cancels in the exact
    # renormalization below (attn = sm / (sum(sm) + 1e-13)); only the 1e-13 guard
    # term sees it, which is ~1e-13 relative -> far below the 1e-5 tolerance.
    sm = e * pl.reciprocal(jnp.sum(e, axis=-1, keepdims=True), approx=True)
    sm = sm * mask
    attn = sm * pl.reciprocal(jnp.sum(sm, axis=-1, keepdims=True) + 1e-13)  # (TB, T)

    # --- pooled = attn^T @ xinit: broadcast-multiply + reduce over T --------------
    # (one tiny relayout of attn from lanes to a (TB, T, 1) column)
    pooled = jnp.sum(attn[..., None] * x, axis=1)               # (TB, H) f32
    o_ref[...] = pooled.astype(o_ref.dtype)


def _vmem_config():
    """Generation-aware scoped-VMEM limit, per-step block budget, and multi-TC flag."""
    vmem_cap = None
    try:
        vmem_cap = int(pltpu.get_tpu_info().vmem_capacity_bytes)
    except Exception:
        vmem_cap = None
    kind = ""
    try:
        kind = jax.devices()[0].device_kind.lower()
    except Exception:
        pass
    is_v7 = ("7x" in kind) or ("v7" in kind)
    if vmem_cap is None:
        vmem_cap = (64 if is_v7 else 128) * 1024 * 1024
    # megacore / multi-TensorCore chips where the parallel grid axis is sharded
    multi_tc = is_v7 or ("v5p" in kind) or ("v4" in kind and "lite" not in kind)
    vmem_limit = min(vmem_cap * 5 // 8, 64 * 1024 * 1024)       # ~40 MiB on v7x, 64 MiB on v5e/v6e
    block_budget = min(vmem_cap * 3 // 8, 40 * 1024 * 1024)     # ~24 MiB on v7x, 40 MiB on v5e/v6e
    return vmem_limit, block_budget, multi_tc


def _choose_block_b(B, T, H, P, x_itemsize, block_budget, multi_tc):
    """Largest divisor of B whose per-step working set fits the VMEM block budget.

    Using divisors of B (1 always qualifies) means the wrapper never has to jnp.pad
    xinit, so the bandwidth-critical slab is streamed from HBM exactly once.
    """
    fixed = 2 * H * P * x_itemsize + 4 * 3 * P + 64              # resident weights + biases
    per_batch = (2 * T * H * x_itemsize                          # xinit block, double-buffered
                 + 2 * T * 4                                     # mask block, double-buffered (f32)
                 + 4 * T * P                                     # h = relu(x@W1+b1), f32
                 + 4 * T * H                                     # pooled broadcast-multiply temp, f32
                 + 10 * T * 4                                    # softmax temporaries, f32
                 + 2 * H * x_itemsize)                           # output block, double-buffered
    tb_cap = max(1, (block_budget - fixed) // per_batch)

    hi = int(min(B, tb_cap))
    divisors = [d for d in range(1, hi + 1) if B % d == 0]
    if not divisors:
        divisors = [1]

    if multi_tc and B >= 2:
        # keep >= 2 grid steps so both TensorCores get work; prefer an even step count
        even = [d for d in divisors if (B // d) % 2 == 0]
        if even:
            return max(even)
        multi = [d for d in divisors if (B // d) >= 2]
        if multi:
            return max(multi)
    return max(divisors)


def attn_pooling(xinit, xmask, w1, b1, w2, b2, *, block_b=None):
    B, T, H = xinit.shape
    P = w1.shape[1]
    x_itemsize = jnp.dtype(xinit.dtype).itemsize

    vmem_limit, block_budget, multi_tc = _vmem_config()
    if block_b is None:
        block_b = _choose_block_b(B, T, H, P, x_itemsize, block_budget, multi_tc)
    block_b = max(1, min(int(block_b), B))
    if B % block_b != 0:
        # user-supplied block_b that doesn't divide B: fall back to largest divisor <= block_b
        block_b = max(d for d in range(1, block_b + 1) if B % d == 0)
    grid_b = B // block_b

    # wrapper-side layout plumbing (cheap, done once): matmul weight in the x dtype,
    # small f32 row vectors for the VPU path, lane-dense 2-D mask.
    w1c = w1.astype(xinit.dtype)                       # (H, P), MXU input dtype
    b1_2d = b1.reshape(1, P).astype(jnp.float32)
    w2_row = w2.reshape(1, P).astype(jnp.float32)      # (P,1) -> (1,P) row
    b2_2d = b2.reshape(1, 1).astype(jnp.float32)
    m2 = xmask.astype(jnp.float32)                     # (B, T), lane-dense

    # advisory cost hint for the XLA scheduler
    flops = 2 * B * T * H * P + 2 * B * T * P + 8 * B * T + 2 * B * T * H
    bytes_accessed = (xinit.size * x_itemsize + m2.size * 4 + B * H * x_itemsize
                      + w1c.size * jnp.dtype(w1c.dtype).itemsize + 4 * (2 * P + 1))
    cost = pl.CostEstimate(flops=int(flops), transcendentals=int(B * T),
                           bytes_accessed=int(bytes_accessed))

    out = pl.pallas_call(
        attn_pool_kernel,
        out_shape=jax.ShapeDtypeStruct((B, H), xinit.dtype),
        grid_spec=pltpu.PrefetchScalarGridSpec(
            num_scalar_prefetch=0,
            grid=(grid_b,),
            in_specs=[
                pl.BlockSpec((block_b, T, H), lambda b: (b, 0, 0)),   # xinit slab (streamed)
                pl.BlockSpec((block_b, T), lambda b: (b, 0)),         # mask, lane-dense
                pl.BlockSpec((H, P), lambda b: (0, 0)),               # W1 (constant index -> fetched once)
                pl.BlockSpec((1, P), lambda b: (0, 0)),               # b1
                pl.BlockSpec((1, P), lambda b: (0, 0)),               # W2 row
                pl.BlockSpec((1, 1), lambda b: (0, 0)),               # b2
            ],
            out_specs=pl.BlockSpec((block_b, H), lambda b: (b, 0)),
        ),
        compiler_params=pltpu.CompilerParams(
            dimension_semantics=("parallel",),
            vmem_limit_bytes=int(vmem_limit)),
        cost_estimate=cost,
    )(xinit, m2, w1c, b1_2d, w2_row, b2_2d)

    return out


def attn_pooling_ref(xinit, xmask, w1, b1, w2, b2):
    # pure-JAX reference mirroring the PyTorch forward
    h = jnp.maximum(jnp.einsum("bth,hp->btp", xinit, w1) + b1, 0.0)
    h = h * xmask[..., None]
    logits = (jnp.einsum("btp,po->bto", h, w2) + b2)[..., 0]          # (B, T)
    v = jax.nn.softmax(logits * xmask, axis=-1)
    v = v * xmask
    attn = v / (jnp.sum(v, axis=-1, keepdims=True) + 1e-13)
    return jnp.einsum("bt,bth->bh", attn, xinit)


if __name__ == "__main__":
    B, T, H, P = 2, 8, 32, 16
    key = jax.random.PRNGKey(0)
    k1, k2, k3, k4, k5 = jax.random.split(key, 5)

    xinit = jax.random.normal(k1, (B, T, H), dtype=jnp.float32)
    # deterministic mask: first batch fully valid, second batch half masked
    xmask = jnp.stack([jnp.ones((T,), jnp.float32),
                       jnp.concatenate([jnp.ones((T // 2,), jnp.float32),
                                        jnp.zeros((T - T // 2,), jnp.float32)])])

    # deterministic parameter init (synthetic, not a checkpoint load)
    w1 = 0.1 * jax.random.normal(k2, (H, P), dtype=jnp.float32)
    b1 = 0.1 * jax.random.normal(k3, (P,), dtype=jnp.float32)
    w2 = 0.1 * jax.random.normal(k4, (P, 1), dtype=jnp.float32)
    b2 = 0.1 * jax.random.normal(k5, (1,), dtype=jnp.float32)

    out = attn_pooling(xinit, xmask, w1, b1, w2, b2)
    out = jax.block_until_ready(out)

    ref = attn_pooling_ref(xinit, xmask, w1, b1, w2, b2)
    assert out.shape == (B, H)
    assert jnp.allclose(out, ref, atol=1e-5, rtol=1e-5)

    print("KERNEL_OK")
</pallas_src>

<mosaic_0001>
module attributes {stable_mosaic.version = 11 : i64} {
  func.func @attn_pool_kernel(%arg0: i32, %arg1: memref<2x8x32xf32, #tpu.memory_space<vmem>>, %arg2: memref<2x8xf32, #tpu.memory_space<vmem>>, %arg3: memref<32x16xf32, #tpu.memory_space<vmem>>, %arg4: memref<1x16xf32, #tpu.memory_space<vmem>>, %arg5: memref<1x16xf32, #tpu.memory_space<vmem>>, %arg6: memref<1x1xf32, #tpu.memory_space<vmem>>, %arg7: memref<2x32xf32, #tpu.memory_space<vmem>>) attributes {dimension_semantics = [#tpu.dimension_semantics<parallel>], iteration_bounds = array<i64: 1>, scalar_prefetch = 0 : i64, scratch_operands = 0 : i64, tpu.core_type = #tpu.core_type<tc>, window_params = [{transform_indices = @transform_0, window_bounds = array<i64: 2, 8, 32>}, {transform_indices = @transform_1, window_bounds = array<i64: 2, 8>}, {pipeline_mode = #tpu.pipeline_mode<synchronous>, transform_indices = @transform_2, window_bounds = array<i64: 32, 16>}, {pipeline_mode = #tpu.pipeline_mode<synchronous>, transform_indices = @transform_3, window_bounds = array<i64: 1, 16>}, {pipeline_mode = #tpu.pipeline_mode<synchronous>, transform_indices = @transform_4, window_bounds = array<i64: 1, 16>}, {pipeline_mode = #tpu.pipeline_mode<synchronous>, transform_indices = @transform_5, window_bounds = array<i64: 1, 1>}, {transform_indices = @transform_6, window_bounds = array<i64: 2, 32>}]} {
    %c0 = arith.constant 0 : index
    %c0_0 = arith.constant 0 : index
    %c0_1 = arith.constant 0 : index
    %0 = vector.load %arg1[%c0, %c0_0, %c0_1] : memref<2x8x32xf32, #tpu.memory_space<vmem>>, vector<2x8x32xf32>
    %c0_2 = arith.constant 0 : index
    %c0_3 = arith.constant 0 : index
    %1 = vector.load %arg2[%c0_2, %c0_3] : memref<2x8xf32, #tpu.memory_space<vmem>>, vector<2x8xf32>
    %2 = vector.shape_cast %0 : vector<2x8x32xf32> to vector<16x32xf32>
    %c0_4 = arith.constant 0 : index
    %c0_5 = arith.constant 0 : index
    %3 = vector.load %arg3[%c0_4, %c0_5] : memref<32x16xf32, #tpu.memory_space<vmem>>, vector<32x16xf32>
    %cst = arith.constant dense<0.000000e+00> : vector<16x16xf32>
    %4 = tpu.matmul %2, %3, %cst {dimension_numbers = #tpu.dot_dimension_numbers<[1], [0], [0], [1], [0, 0, 1, 1], [], []>} : vector<16x32xf32>, vector<32x16xf32>, vector<16x16xf32> -> vector<16x16xf32>
    %c0_6 = arith.constant 0 : index
    %c0_7 = arith.constant 0 : index
    %5 = vector.load %arg4[%c0_6, %c0_7] : memref<1x16xf32, #tpu.memory_space<vmem>>, vector<1x16xf32>
    %6 = vector.broadcast %5 : vector<1x16xf32> to vector<16x16xf32>
    %7 = arith.addf %4, %6 : vector<16x16xf32>
    %cst_8 = arith.constant 0.000000e+00 : f32
    %8 = vector.broadcast %cst_8 : f32 to vector<16x16xf32>
    %9 = arith.maximumf %7, %8 : vector<16x16xf32>
    %10 = vector.shape_cast %9 : vector<16x16xf32> to vector<2x8x16xf32>
    %c0_9 = arith.constant 0 : index
    %c0_10 = arith.constant 0 : index
    %11 = vector.load %arg5[%c0_9, %c0_10] : memref<1x16xf32, #tpu.memory_space<vmem>>, vector<1x16xf32>
    %12 = vector.shape_cast %11 : vector<1x16xf32> to vector<1x1x16xf32>
    %13 = vector.broadcast %12 : vector<1x1x16xf32> to vector<2x8x16xf32>
    %14 = arith.mulf %10, %13 : vector<2x8x16xf32>
    %cst_11 = arith.constant dense<0.000000e+00> : vector<2x8xf32>
    %15 = vector.multi_reduction <add>, %14, %cst_11 [2] : vector<2x8x16xf32> to vector<2x8xf32>
    %16 = arith.mulf %15, %1 : vector<2x8xf32>
    %c0_12 = arith.constant 0 : index
    %c0_13 = arith.constant 0 : index
    %17 = vector.load %arg6[%c0_12, %c0_13] : memref<1x1xf32, #tpu.memory_space<vmem>>, vector<1x1xf32>
    %18 = vector.broadcast %17 : vector<1x1xf32> to vector<2x8xf32>
    %19 = arith.addf %16, %18 : vector<2x8xf32>
    %20 = arith.mulf %19, %1 : vector<2x8xf32>
    %cst_14 = arith.constant dense<0xFF800000> : vector<2xf32>
    %21 = vector.multi_reduction <maximumf>, %20, %cst_14 [1] : vector<2x8xf32> to vector<2xf32>
    %22 = vector.shape_cast %21 : vector<2xf32> to vector<2x1xf32>
    %23 = vector.broadcast %22 : vector<2x1xf32> to vector<2x8xf32>
    %24 = arith.subf %20, %23 : vector<2x8xf32>
    %25 = math.exp %24 : vector<2x8xf32>
    %cst_15 = arith.constant dense<0.000000e+00> : vector<2xf32>
    %26 = vector.multi_reduction <add>, %25, %cst_15 [1] : vector<2x8xf32> to vector<2xf32>
    %27 = vector.shape_cast %26 : vector<2xf32> to vector<2x1xf32>
    %28 = tpu.reciprocal %27 {approx = true} : vector<2x1xf32> -> vector<2x1xf32>
    %29 = vector.broadcast %28 : vector<2x1xf32> to vector<2x8xf32>
    %30 = arith.mulf %25, %29 : vector<2x8xf32>
    %31 = arith.mulf %30, %1 : vector<2x8xf32>
    %cst_16 = arith.constant dense<0.000000e+00> : vector<2xf32>
    %32 = vector.multi_reduction <add>, %31, %cst_16 [1] : vector<2x8xf32> to vector<2xf32>
    %33 = vector.shape_cast %32 : vector<2xf32> to vector<2x1xf32>
    %cst_17 = arith.constant 9.99999982E-14 : f32
    %34 = vector.broadcast %cst_17 : f32 to vector<2x1xf32>
    %35 = arith.addf %33, %34 : vector<2x1xf32>
    %36 = tpu.reciprocal %35 : vector<2x1xf32> -> vector<2x1xf32>
    %37 = vector.broadcast %36 : vector<2x1xf32> to vector<2x8xf32>
    %38 = arith.mulf %31, %37 : vector<2x8xf32>
    %39 = vector.shape_cast %38 : vector<2x8xf32> to vector<2x8x1xf32>
    %40 = vector.broadcast %39 : vector<2x8x1xf32> to vector<2x8x32xf32>
    %41 = arith.mulf %40, %0 : vector<2x8x32xf32>
    %cst_18 = arith.constant dense<0.000000e+00> : vector<2x32xf32>
    %42 = vector.multi_reduction <add>, %41, %cst_18 [1] : vector<2x8x32xf32> to vector<2x32xf32>
    %c0_19 = arith.constant 0 : index
    %c0_20 = arith.constant 0 : index
    %43 = vector.load %arg7[%c0_19, %c0_20] : memref<2x32xf32, #tpu.memory_space<vmem>>, vector<2x32xf32>
    tpu.vector_store %arg7[%c0_19, %c0_20], %42 {strides = array<i32>} : memref<2x32xf32, #tpu.memory_space<vmem>>, vector<2x32xf32>,
    return
  }
  func.func @transform_0(%arg0: i32) -> (i32, i32, i32) {
    %c0_i32 = arith.constant 0 : i32
    %c0_i32_0 = arith.constant 0 : i32
    %c0_i32_1 = arith.constant 0 : i32
    return %arg0, %c0_i32, %c0_i32_0 : i32, i32, i32
  }
  func.func @transform_1(%arg0: i32) -> (i32, i32) {
    %c0_i32 = arith.constant 0 : i32
    %c0_i32_0 = arith.constant 0 : i32
    return %arg0, %c0_i32 : i32, i32
  }
  func.func @transform_2(%arg0: i32) -> (i32, i32) {
    %c0_i32 = arith.constant 0 : i32
    %c0_i32_0 = arith.constant 0 : i32
    %c0_i32_1 = arith.constant 0 : i32
    return %c0_i32, %c0_i32_0 : i32, i32
  }
  func.func @transform_3(%arg0: i32) -> (i32, i32) {
    %c0_i32 = arith.constant 0 : i32
    %c0_i32_0 = arith.constant 0 : i32
    %c0_i32_1 = arith.constant 0 : i32
    return %c0_i32, %c0_i32_0 : i32, i32
  }
  func.func @transform_4(%arg0: i32) -> (i32, i32) {
    %c0_i32 = arith.constant 0 : i32
    %c0_i32_0 = arith.constant 0 : i32
    %c0_i32_1 = arith.constant 0 : i32
    return %c0_i32, %c0_i32_0 : i32, i32
  }
  func.func @transform_5(%arg0: i32) -> (i32, i32) {
    %c0_i32 = arith.constant 0 : i32
    %c0_i32_0 = arith.constant 0 : i32
    %c0_i32_1 = arith.constant 0 : i32
    return %c0_i32, %c0_i32_0 : i32, i32
  }
  func.func @transform_6(%arg0: i32) -> (i32, i32) {
    %c0_i32 = arith.constant 0 : i32
    %c0_i32_0 = arith.constant 0 : i32
    return %arg0, %c0_i32 : i32, i32
  }
}

</mosaic_0001>

<bundles_post_ra>
// kernel: tpu_custom_call.1
= control target key start
LH: loop header
LB: loop body
LE: loop exit
PB: predicated region body
PF: predicated region fallthrough
CT: control target
= control target key end

     0   :  { %s491_s0 = inlined_call_operand.vmem [shape: f32[2,8,32], index: 0, kind: input, shape index: {}]   ;;  %s492_s1 = inlined_call_operand.vmem [shape: f32[2,8], index: 1, kind: input, shape index: {}]   ;;  %s493_s2 = inlined_call_operand.vmem [shape: f32[32,16], index: 2, kind: input, shape index: {}]   ;;  %s494_s3 = inlined_call_operand.vmem [shape: f32[1,16], index: 3, kind: input, shape index: {}]   ;;  %s495_s4 = inlined_call_operand.vmem [shape: f32[1,16], index: 4, kind: input, shape index: {}]   ;;  %s496_s5 = inlined_call_operand.<no memory space> [shape: f32[1,1], index: 5, kind: input, shape index: {}]   ;;  %s497_s6 = inlined_call_operand.hbm [shape: f32[2,32], index: 6, kind: output, shape index: {}]  }
   0x1   :  { %v11_v0 = vstv %s496_s5 }
   0x2   :  { %12 = vst [vmem:[#allocation2] sm:$0x1] %v11_v0 }
   0x3   :  { %v32_v1 = vld [vmem:[%s493_s2 + $0x18] sm:$0xff]  ;;  %v31_v2 = vld [vmem:[%s493_s2 + $0x10] sm:$0xff]  ;;  %vm40_vm0 = vcmask 261120   ;;  %v439_v3 = vld [vmem:[%s491_s0] sm:$0xff] }
   0x4   :  { %345 = vmatprep.subr.mxu0 %v32_v1  ;;  %v30_v4 = vld [vmem:[%s493_s2 + $0x8] sm:$0xff]  ;;  %353 = vmatprep.mubr.msk.f32.mxu0 %vm40_vm0, %v439_v3 }
   0x5   :  { %346 = vmatpush3.msra.mxu0 %v32_v1 }
   0x6   :  { %13 = vsyncpa [#allocation4], 0  ;;  %347 = vmatprep.subr.mxu0 %v31_v2  ;;  %v29_v5 = vld [vmem:[%s493_s2] sm:$0xff]  ;;  %v452_v6 = vld [vmem:[%s491_s0 + $0x8] sm:$0xff]  ;;  %v141_v8 = vlaneseq  ;;  %v390_v9 = vmov 0   ;;  %vm133_vm1 = vcmask 130048  }
   0x7   :  { %348 = vmatpush3.msra.mxu0 %v31_v2  ;;  %358 = vset.pattern.permute.xlu1 %v390_v9  ;;  %v28_v11 = vld [vmem:[%s492_s1] sm:$0x3]  ;;  %vm191_vm2 = vcmask 1041409   ;;  %vm194_vm3 = vcmask 58368   ;;  %s391_s1 = smov [#allocation3]   ;;  %vm318_vm4 = vcmask 254976  }
   0x8   :  { %349 = vmatprep.subr.mxu0 %v30_v4  ;;  %359 = vset.pattern.permute.xlu0 %v390_v9  ;;  %v142_v10 = vshrl.u32 %v141_v8, 7  ;;  %v334_v14 = vld [vmem:[%s494_s3] ss:$0 sm:$0xff]  ;;  %v182_v39 = vand.u32 127, %v141_v8  ;;  %s326_s3 = sshll.u32 %s391_s1, 4  ;;  %s327_s3 = int_to_ptr.vmem [resolvable:$true] %s326_s3 }
   0x9   :  { %350 = vmatpush3.msra.mxu0 %v30_v4  ;;  %v338_v7 = vld [vmem:[#allocation2] ss:$0 sm:$0xff]  ;;  %p373_p1 = scmp.lt.s32.totalorder %s327_s3, %s327_s3 }
   0xa   :  { %351 = vmatprep.subr.mxu0 %v29_v5  ;;  %166 = vperm.xlu1 %358, %v338_v7   ;;  %v459_v12 = vsub.s32 0, %v142_v10  ;;  %v337_v18 = vld [vmem:[%s495_s4] ss:$0 sm:$0xff]  ;;  %v468_v26 = vsub.s32 1, %v142_v10  ;;  %v185_v41 = vsub.s32 %v182_v39, %v142_v10  ;;  %s368_s4 = scalar_lea.vmem %s327_s3, 32 }
   0xb   :  { %352 = vmatpush3.msra.mxu0 %v29_v5  ;;  %p369_p0 = scmp.ne.s32.totalorder %s327_s3, %s368_s4  ;;  %p374_p2 = scmp.lt.s32.totalorder %s368_s4, %s368_s4 }
   0xc   :  { %354 = vmatmul.mubr.msk.f32.vlgmr.msra.gmra.mxu0 %vm40_vm0, %v452_v6  ;;  %v144_v13 = vrot.slane %v28_v11, %v459_v12  ;;  %v151_v27 = vrot.slane %v28_v11, %v468_v26 }
   0xd   :  { %p375_p3 = por %p374_p2, %p373_p1 }
   0xe   :  { %146 = vbcast.lane.b32.xlu1 %v144_v13, 256 }
   0xf   :  { %p376_p4 = pnand %p375_p3, %p369_p0 }
  0x85   :  { %v167_v28 = vpop.permute.xlu1 %166 }
  0x89   :  { %v147_v30 = vpop.permute.xlu1 %146 }
  0xcc   :  { %v355_v15 = vpop.f32.mrf.mxu0 }
  0xcd   :  { %v119_v16 = vadd.f32 %v355_v15, %v334_v14 }
  0xce   :  { %v113_v17 = vpop.f32.mrf.mxu0 }
  0xcf   :  { %v123_v19 = vmax.f32 %v119_v16, 0.0  ;;  %v114_v20 = vadd.f32 %v334_v14, %v113_v17 }
  0xd1   :  { %v122_v21 = vmax.f32 %v114_v20, 0.0  ;;  %v132_v22 = vmul.f32 %v337_v18, %v123_v19 }
  0xd3   :  { %v137_v23 = vsel %vm133_vm1, %v132_v22, 0.0  ;;  %v131_v24 = vmul.f32 %v337_v18, %v122_v21 }
  0xd4   :  { %138 = vadd.xlane.f32.xlu0 %v137_v23 }
  0xd5   :  { %v134_v25 = vsel %vm133_vm1, %v131_v24, 0.0 }
  0xd8   :  { %135 = vadd.xlane.f32.xlu0 %v134_v25 }
  0xee   :  { %153 = vbcast.lane.b32.xlu0 %v151_v27, 256 }
 0x15d   :  { %v139_v29 = vpop.xlane.xlu0 %138 }
 0x161   :  { %v136_v31 = vpop.xlane.xlu0 %135 }
 0x162   :  { %v157_v32 = vmul.f32 %v147_v30, %v136_v31 }
 0x164   :  { %v169_v33 = vadd.f32 %v167_v28, %v157_v32 }
 0x165   :  { %v154_v34 = vpop.permute.xlu0 %153 }
 0x166   :  { %v158_v35 = vmul.f32 %v154_v34, %v139_v29  ;;  %v171_v36 = vmul.f32 %v169_v33, %v147_v30 }
 0x168   :  { %v170_v37 = vadd.f32 %v167_v28, %v158_v35  ;;  %176 = vperm.xlu1 %358, %v171_v36  }
 0x16a   :  { %v172_v38 = vmul.f32 %v170_v37, %v154_v34 }
 0x16c   :  { %179 = vperm.xlu1 %358, %v172_v38  }
 0x1e3   :  { %v177_v40 = vpop.permute.xlu1 %176 }
 0x1e4   :  { %v186_v43 = vrot.slane %v177_v40, %v185_v41 }
 0x1e7   :  { %v180_v42 = vpop.permute.xlu1 %179 }
 0x1e8   :  { %v190_v44 = vrot.slane %v180_v42, %v185_v41 }
 0x1ea   :  { %v192_v45 = vsel %vm191_vm2, %v190_v44, %v186_v43 }
 0x1eb   :  { %v195_v46 = vsel %vm194_vm3, %v192_v45, -inf }
 0x1ec   :  { %196 = vmax.xlane.f32.xlu1 %v195_v46 }
 0x275   :  { %v197_v47 = vpop.xlane.xlu1 %196 }
 0x276   :  { %v202_v48 = vrot.slane %v197_v47, %v459_v12  ;;  %v206_v49 = vrot.slane %v197_v47, %v468_v26 }
 0x278   :  { %v209_v50 = vsub.f32 %v171_v36, %v202_v48  ;;  %v210_v51 = vsub.f32 %v172_v38, %v206_v49 }
 0x27a   :  { %v211_v52 = vmul.f32 1.442695, %v209_v50  ;;  %v213_v53 = vmul.f32 1.442695, %v210_v51 }
 0x27c   :  { %360 = vpow2.f32 %v211_v52 }
 0x27d   :  { %362 = vpow2.f32 %v213_v53 }
 0x289   :  { %v361_v54 = vpop.eup %360 }
 0x28a   :  { %218 = vperm.xlu0 %359, %v361_v54   ;;  %v363_v55 = vpop.eup %362 }
 0x28e   :  { %221 = vperm.xlu0 %359, %v363_v55  }
 0x305   :  { %v219_v56 = vpop.permute.xlu0 %218 }
 0x306   :  { %v226_v58 = vrot.slane %v219_v56, %v185_v41 }
 0x309   :  { %v222_v57 = vpop.permute.xlu0 %221 }
 0x30a   :  { %v230_v59 = vrot.slane %v222_v57, %v185_v41 }
 0x30c   :  { %v231_v60 = vsel %vm191_vm2, %v230_v59, %v226_v58 }
 0x30d   :  { %v233_v61 = vsel %vm194_vm3, %v231_v60, 0.0 }
 0x30e   :  { %234 = vadd.xlane.f32.xlu0 %v233_v61 }
 0x397   :  { %v235_v62 = vpop.xlane.xlu0 %234 }
 0x398   :  { %364 = vrcp.f32 %v235_v62 }
 0x3a5   :  { %v365_v63 = vpop.eup %364 }
 0x3a6   :  { %v241_v0 = vrot.slane %v365_v63, %v459_v12  ;;  %v245_v1 = vrot.slane %v365_v63, %v468_v26 }
 0x3a8   :  { %v248_v2 = vmul.f32 %v361_v54, %v241_v0  ;;  %v249_v5 = vmul.f32 %v363_v55, %v245_v1 }
 0x3aa   :  { %v250_v4 = vmul.f32 %v248_v2, %v147_v30  ;;  %v251_v7 = vmul.f32 %v249_v5, %v154_v34 }
 0x3ac   :  { %255 = vperm.xlu1 %358, %v250_v4  }
 0x3b0   :  { %258 = vperm.xlu1 %358, %v251_v7  }
 0x427   :  { %v256_v8 = vpop.permute.xlu1 %255 }
 0x428   :  { %v263_v10 = vrot.slane %v256_v8, %v185_v41 }
 0x42b   :  { %v259_v9 = vpop.permute.xlu1 %258 }
 0x42c   :  { %v267_v11 = vrot.slane %v259_v9, %v185_v41 }
 0x42e   :  { %v268_v13 = vsel %vm191_vm2, %v267_v11, %v263_v10 }
 0x42f   :  { %v270_v14 = vsel %vm194_vm3, %v268_v13, 0.0 }
 0x430   :  { %271 = vadd.xlane.f32.xlu0 %v270_v14 }
 0x4b9   :  { %v272_v15 = vpop.xlane.xlu0 %271 }
 0x4ba   :  { %v273_v16 = vadd.f32 1e-13, %v272_v15 }
 0x4bc   :  { %366 = vrcp.f32 %v273_v16 }
 0x4c9   :  { %v367_v17 = vpop.eup %366 }
 0x4ca   :  { %v283_v18 = vrot.slane %v367_v17, %v468_v26  ;;  %v279_v19 = vrot.slane %v367_v17, %v459_v12 }
 0x4cc   :  { %v287_v20 = vmul.f32 %v283_v18, %v251_v7  ;;  %v286_v21 = vmul.f32 %v279_v19, %v250_v4 }
 0x4ce   :  { %295 = vperm.xlu0 %359, %v287_v20   ;;  %290 = vperm.xlu1 %358, %v286_v21  }
 0x549   :  { %v296_v22 = vpop.permute.xlu0 %295  ;;  %v291_v23 = vpop.permute.xlu1 %290 }
 0x54a   :  { %v299_v24 = vmul.f32 %v296_v22, %v452_v6  ;;  %v298_v25 = vmul.f32 %v291_v23, %v439_v3 }
 0x54c   :  { %v307_v27 = vsel %vm40_vm0, %v299_v24, 0.0  ;;  %v300_v28 = vsel %vm40_vm0, %v298_v25, 0.0 }
 0x54d   :  { %v308_v29 = vrot.slane %v307_v27, 4  ;;  %v301_v30 = vrot.slane %v300_v28, 4 }
 0x54f   :  { %v309_v31 = vadd.f32 %v308_v29, %v307_v27  ;;  %v302_v26 = vadd.f32 %v301_v30, %v300_v28 }
 0x551   :  { %v310_v32 = vrot.slane %v309_v31, 2  ;;  %v303_v12 = vrot.slane %v302_v26, 2 }
 0x553   :  { %v311_v33 = vadd.f32 %v310_v32, %v309_v31  ;;  %v304_v34 = vadd.f32 %v303_v12, %v302_v26 }
 0x555   :  { %v312_v35 = vrot.slane %v311_v33, 1  ;;  %v305_v36 = vrot.slane %v304_v34, 1 }
 0x557   :  { %v306_v37 = vadd.f32 %v305_v36, %v304_v34  ;;  %v313_v6 = vadd.f32 %v312_v35, %v311_v33 }
 0x559   :  { %v316_v3 = vsel %vm191_vm2, %v313_v6, %v306_v37 }
 0x55a   :  { %319 = vst.msk [vmem:[#allocation3] sm:$0x3] %vm318_vm4, %v316_v3 }
 0x55b   :  { %379 = shalt.err (!%p376_p4)
}
 0x55c   :  { %329 = dma.vmem_to_hbm [thread:$0]  %s327_s3, 32, %s497_s6, [#allocation4]  }
 0x55d   :  { %388 = dma.done.wait [#allocation4], 32  }
 0x55e   :  { %389 = vsyncadd [#allocation4], 4294967264 }
 0x55f   :  { %333 = vsyncpa [#allocation4], 1 }

</bundles_post_ra>
